<compile_context>
chip_gen: v7x
topology: tpu7x:2x2x1
jax: 0.10.0
libtpu: 0.0.40
codegen_flags: <defaults>
</compile_context>

<pallas_src>
import functools
import math

import jax
import jax.numpy as jnp
from jax.experimental import pallas as pl
from jax.experimental.pallas import tpu as pltpu


def _round_up(a, b):
    return (a + b - 1) // b * b


def _vmem_limit_bytes():
    """Scoped-VMEM cap: physical capacity minus headroom for compiler scratch."""
    cap = 64 * 1024 * 1024
    try:
        info = pltpu.get_tpu_info()
        cap = int(getattr(info, "vmem_capacity_bytes", cap))
    except Exception:
        pass
    return int(max(cap - 16 * 1024 * 1024, 32 * 1024 * 1024))


VMEM_LIMIT = _vmem_limit_bytes()


# ---------------------------------------------------------------------------
# shared in-kernel masked LayerNorm (f32 math, biased variance like torch)
# ---------------------------------------------------------------------------
def _masked_ln(x, m, g, b, eps):
    x = x * m                                            # (tm, d) * (tm, 1)
    mu = jnp.mean(x, axis=-1, keepdims=True)
    xc = x - mu
    var = jnp.mean(xc * xc, axis=-1, keepdims=True)
    return xc * jax.lax.rsqrt(var + eps) * g + b


# ---------------------------------------------------------------------------
# Kernel 1: LN_att(x*mask) -> Q/K/V projections (bf16 outputs)
# ---------------------------------------------------------------------------
def _ln_qkv_kernel(x_ref, m_ref, g_ref, b_ref,
                   wq_ref, wk_ref, wv_ref, bq_ref, bk_ref, bv_ref,
                   q_ref, k_ref, v_ref, *, eps):
    xn = _masked_ln(x_ref[...], m_ref[...], g_ref[...], b_ref[...],
                    eps).astype(jnp.bfloat16)
    for w_ref, bias_ref, o_ref in ((wq_ref, bq_ref, q_ref),
                                   (wk_ref, bk_ref, k_ref),
                                   (wv_ref, bv_ref, v_ref)):
        y = jnp.dot(xn, w_ref[...], preferred_element_type=jnp.float32)
        o_ref[...] = (y + bias_ref[...]).astype(o_ref.dtype)


def ln_qkv(x2d, mask2d, p, *, tm, eps):
    Mp, d = x2d.shape
    cost = pl.CostEstimate(
        flops=3 * 2 * Mp * d * d, transcendentals=Mp,
        bytes_accessed=Mp * d * 4 + Mp * 4 + 3 * d * d * 2 + 3 * Mp * d * 2)

    row = pl.BlockSpec((tm, d), lambda i: (i, 0))
    col = pl.BlockSpec((tm, 1), lambda i: (i, 0))
    full_w = pl.BlockSpec((d, d), lambda i: (0, 0))
    vec = pl.BlockSpec((1, d), lambda i: (0, 0))
    out = pl.BlockSpec((tm, d), lambda i: (i, 0))

    return pl.pallas_call(
        functools.partial(_ln_qkv_kernel, eps=eps),
        out_shape=tuple(jax.ShapeDtypeStruct((Mp, d), jnp.bfloat16) for _ in range(3)),
        grid_spec=pltpu.PrefetchScalarGridSpec(
            num_scalar_prefetch=0,
            grid=(Mp // tm,),
            in_specs=[row, col, vec, vec, full_w, full_w, full_w, vec, vec, vec],
            out_specs=[out, out, out],
        ),
        compiler_params=pltpu.CompilerParams(
            dimension_semantics=("parallel",), vmem_limit_bytes=VMEM_LIMIT),
        cost_estimate=cost,
    )(x2d, mask2d, p["ln_att_g"], p["ln_att_b"],
      p["w_q"], p["w_k"], p["w_v"], p["b_q"], p["b_k"], p["b_v"])


# ---------------------------------------------------------------------------
# Kernel 2: multi-head attention + out-projection + residual, one batch / step.
# Mask semantics match torch: masked_fill over *query* rows (mask (B,1,S,1)).
# ---------------------------------------------------------------------------
def _mha_out_kernel(q_ref, k_ref, v_ref, m_ref, x_ref, wo_ref, bo_ref, o_ref,
                    *, num_head, scale):
    q = q_ref[...][0]                                    # (S, d_model) bf16
    k = k_ref[...][0]
    v = v_ref[...][0]
    m = m_ref[...][0]                                    # (S, 1) f32 query mask
    dk = q.shape[-1] // num_head

    ctx = []
    for h in range(num_head):                            # static unroll over heads
        sl = slice(h * dk, (h + 1) * dk)
        s = jax.lax.dot_general(q[:, sl], k[:, sl], (((1,), (1,)), ((), ())),
                                preferred_element_type=jnp.float32) * scale
        s = jnp.where(m == 0.0, -1e9, s)
        s = s - jnp.max(s, axis=-1, keepdims=True)
        p = jnp.exp(s)
        p = p * pl.reciprocal(jnp.sum(p, axis=-1, keepdims=True), approx=True)
        # attention dropout: identity (eval mode)
        ctx.append(jnp.dot(p.astype(jnp.bfloat16), v[:, sl],
                           preferred_element_type=jnp.float32))
    ctx = jnp.concatenate(ctx, axis=-1).astype(jnp.bfloat16)   # (S, d_model)

    y = jnp.dot(ctx, wo_ref[...], preferred_element_type=jnp.float32)
    y = y + bo_ref[...] + x_ref[...][0]                  # out-proj bias + residual x
    o_ref[...] = y[None, :, :].astype(o_ref.dtype)


def mha_out(q, k, v, mask, x, p, *, num_head, scale):
    B, S, d = q.shape
    dk = d // num_head
    cost = pl.CostEstimate(
        flops=B * (num_head * 4 * S * S * dk + 2 * S * d * d),
        transcendentals=B * num_head * S * S,
        bytes_accessed=3 * B * S * d * 2 + B * S * 4 + 2 * B * S * d * 4 + d * d * 2)

    bsd = pl.BlockSpec((1, S, d), lambda b: (b, 0, 0))
    msk = pl.BlockSpec((1, S, 1), lambda b: (b, 0, 0))
    wo = pl.BlockSpec((d, d), lambda b: (0, 0))
    bo = pl.BlockSpec((1, d), lambda b: (0, 0))

    return pl.pallas_call(
        functools.partial(_mha_out_kernel, num_head=num_head, scale=scale),
        out_shape=jax.ShapeDtypeStruct((B, S, d), jnp.float32),
        grid_spec=pltpu.PrefetchScalarGridSpec(
            num_scalar_prefetch=0,
            grid=(B,),
            in_specs=[bsd, bsd, bsd, msk, bsd, wo, bo],
            out_specs=pl.BlockSpec((1, S, d), lambda b: (b, 0, 0)),
        ),
        compiler_params=pltpu.CompilerParams(
            dimension_semantics=("parallel",), vmem_limit_bytes=VMEM_LIMIT),
        cost_estimate=cost,
    )(q, k, v, mask, x, p["w_o"], p["b_o"])


# ---------------------------------------------------------------------------
# Kernel 3: LN_ffn(x_res*mask) -> W2(relu(W1 . + b1)) + b2 + x_res
# grid = (row tiles [parallel], d_ff chunks [arbitrary / reduction-last])
# ---------------------------------------------------------------------------
def _ln_ffn_kernel(x_ref, m_ref, g_ref, b_ref, w1_ref, b1_ref, w2_ref, b2_ref,
                   o_ref, xn_ref, acc_ref, *, eps):
    f = pl.program_id(1)

    @pl.when(f == 0)
    def _init():
        xn_ref[...] = _masked_ln(x_ref[...], m_ref[...], g_ref[...], b_ref[...],
                                 eps).astype(xn_ref.dtype)
        acc_ref[...] = jnp.zeros_like(acc_ref)

    h = jnp.dot(xn_ref[...], w1_ref[...], preferred_element_type=jnp.float32)
    h = jnp.maximum(h + b1_ref[...], 0.0)                # bias + ReLU in f32
    # hidden dropout: identity (eval mode)
    acc_ref[...] += jnp.dot(h.astype(jnp.bfloat16), w2_ref[...],
                            preferred_element_type=jnp.float32)

    @pl.when(f == pl.num_programs(1) - 1)
    def _fin():
        # residual is the same x_res tile the LN consumed (still resident in VMEM)
        o_ref[...] = (acc_ref[...] + b2_ref[...] + x_ref[...]).astype(o_ref.dtype)


def _ffn_chunk(d_ff, max_chunk):
    if d_ff <= max_chunk:
        return d_ff                                      # full W1/W2 residency
    for step in (256, 128):                              # 256-multiples first (v6e/v7x MXU)
        tf = (max_chunk // step) * step
        while tf >= step:
            if d_ff % tf == 0:
                return tf
            tf -= step
    return d_ff


def ln_ffn(x2d, mask2d, p, *, tm, eps):
    Mp, d = x2d.shape
    d_ff = p["w1"].shape[1]
    max_chunk = 2048 if VMEM_LIMIT > 80 * 1024 * 1024 else 1024   # generation-aware
    tf = _ffn_chunk(d_ff, max_chunk)

    cost = pl.CostEstimate(
        flops=4 * Mp * d * d_ff, transcendentals=Mp,
        bytes_accessed=2 * Mp * d * 4 + Mp * 4 + (Mp // tm) * 2 * d * d_ff * 2)

    return pl.pallas_call(
        functools.partial(_ln_ffn_kernel, eps=eps),
        out_shape=jax.ShapeDtypeStruct((Mp, d), jnp.float32),
        grid_spec=pltpu.PrefetchScalarGridSpec(
            num_scalar_prefetch=0,
            grid=(Mp // tm, d_ff // tf),
            in_specs=[
                pl.BlockSpec((tm, d), lambda i, f: (i, 0)),   # x_res tile (LN + residual)
                pl.BlockSpec((tm, 1), lambda i, f: (i, 0)),   # mask tile
                pl.BlockSpec((1, d), lambda i, f: (0, 0)),    # LN gamma
                pl.BlockSpec((1, d), lambda i, f: (0, 0)),    # LN beta
                pl.BlockSpec((d, tf), lambda i, f: (0, f)),   # W1 chunk
                pl.BlockSpec((1, tf), lambda i, f: (0, f)),   # b1 chunk
                pl.BlockSpec((tf, d), lambda i, f: (f, 0)),   # W2 chunk
                pl.BlockSpec((1, d), lambda i, f: (0, 0)),    # b2
            ],
            out_specs=pl.BlockSpec((tm, d), lambda i, f: (i, 0)),
            scratch_shapes=[pltpu.VMEM((tm, d), jnp.bfloat16),   # LN(x*mask) cache
                            pltpu.VMEM((tm, d), jnp.float32)],   # f32 accumulator
        ),
        compiler_params=pltpu.CompilerParams(
            dimension_semantics=("parallel", "arbitrary"),
            vmem_limit_bytes=VMEM_LIMIT),
        cost_estimate=cost,
    )(x2d, mask2d, p["ln_ffn_g"], p["ln_ffn_b"], p["w1"], p["b1"], p["w2"], p["b2"])


# ---------------------------------------------------------------------------
# Full EncoderLayer forward
# ---------------------------------------------------------------------------
def prepare_params(params):
    """One-time prep: cast matmul weights to bf16, pre-shape biases/LN params."""
    d_model = params["w_q"].shape[0]
    d_ff = params["w1"].shape[1]
    p = {}
    for name in ("w_q", "w_k", "w_v", "w_o", "w1", "w2"):
        p[name] = params[name].astype(jnp.bfloat16)
    for name, dim in (("b_q", d_model), ("b_k", d_model), ("b_v", d_model),
                      ("b_o", d_model), ("b1", d_ff), ("b2", d_model),
                      ("ln_att_g", d_model), ("ln_att_b", d_model),
                      ("ln_ffn_g", d_model), ("ln_ffn_b", d_model)):
        p[name] = params[name].reshape(1, dim).astype(jnp.float32)
    return p


def encoder_layer_forward(x, mask, prep, *, num_head, tm=512, eps=1e-5):
    """x: (B, S, d_model) f32; mask: (B, S, 1) f32 {0,1}; prep = prepare_params(...)."""
    B, S, d_model = x.shape
    assert d_model % num_head == 0
    dk = d_model // num_head
    M = B * S

    # Row tiling: clamp tm to the (8-rounded) row count, pad rows to a multiple.
    tm = _round_up(min(tm, _round_up(M, 8)), 8)
    Mp = _round_up(M, tm)

    def pad_rows(t):
        return t if t.shape[0] == Mp else jnp.pad(t, ((0, Mp - t.shape[0]), (0, 0)))

    x2d = pad_rows(x.reshape(M, d_model))
    mask2d = pad_rows(mask.reshape(M, 1))

    # 1) fused LN_att + Q/K/V projections (bf16 activations out)
    q2d, k2d, v2d = ln_qkv(x2d, mask2d, prep, tm=tm, eps=eps)

    def to_bsd(t):   # (Mp, d) -> (B, S, d); free when Mp == M
        return t[:M].reshape(B, S, d_model)

    # 2) multi-head attention + out-projection + residual (one grid step per batch)
    x_res = mha_out(to_bsd(q2d), to_bsd(k2d), to_bsd(v2d), mask, x, prep,
                    num_head=num_head, scale=1.0 / math.sqrt(dk))

    # 3) fused LN_ffn + FFN + residual
    out2d = ln_ffn(pad_rows(x_res.reshape(M, d_model)), mask2d, prep, tm=tm, eps=eps)
    return out2d[:M].reshape(B, S, d_model)


# ---------------------------------------------------------------------------
# Params / reference / test
# ---------------------------------------------------------------------------
def init_params(key, d_model, d_ff, dtype=jnp.float32):
    keys = jax.random.split(key, 16)

    def linear_init(kw, kb, d_in, d_out):
        bound = 1.0 / math.sqrt(d_in)
        w = jax.random.uniform(kw, (d_in, d_out), dtype, -bound, bound)
        b = jax.random.uniform(kb, (d_out,), dtype, -bound, bound)
        return w, b

    w_q, b_q = linear_init(keys[0], keys[1], d_model, d_model)
    w_k, b_k = linear_init(keys[2], keys[3], d_model, d_model)
    w_v, b_v = linear_init(keys[4], keys[5], d_model, d_model)
    w_o, b_o = linear_init(keys[6], keys[7], d_model, d_model)
    w1, b1 = linear_init(keys[8], keys[9], d_model, d_ff)
    w2, b2 = linear_init(keys[10], keys[11], d_ff, d_model)

    return dict(
        w_q=w_q, b_q=b_q, w_k=w_k, b_k=b_k, w_v=w_v, b_v=b_v,
        w_o=w_o, b_o=b_o, w1=w1, b1=b1, w2=w2, b2=b2,
        ln_att_g=1.0 + 0.1 * jax.random.normal(keys[12], (d_model,), dtype),
        ln_att_b=0.1 * jax.random.normal(keys[13], (d_model,), dtype),
        ln_ffn_g=1.0 + 0.1 * jax.random.normal(keys[14], (d_model,), dtype),
        ln_ffn_b=0.1 * jax.random.normal(keys[15], (d_model,), dtype),
    )


def reference_encoder_layer(x, mask, p, *, num_head, eps=1e-5):
    B, S, d = x.shape
    dk = d // num_head

    def ln(t, g, b):
        mu = jnp.mean(t, axis=-1, keepdims=True)
        var = jnp.mean((t - mu) ** 2, axis=-1, keepdims=True)
        return (t - mu) * jax.lax.rsqrt(var + eps) * g + b

    xa = ln(x * mask, p["ln_att_g"], p["ln_att_b"])
    q = xa @ p["w_q"] + p["b_q"]
    k = xa @ p["w_k"] + p["b_k"]
    v = xa @ p["w_v"] + p["b_v"]

    def heads(t):
        return t.reshape(B, S, num_head, dk).transpose(0, 2, 1, 3)

    q, k, v = heads(q), heads(k), heads(v)
    scores = jnp.einsum("bhqd,bhkd->bhqk", q, k) / math.sqrt(dk)
    scores = jnp.where(mask.reshape(B, 1, S, 1) == 0, -1e9, scores)
    pattn = jax.nn.softmax(scores, axis=-1)
    ctx = jnp.einsum("bhqk,bhkd->bhqd", pattn, v)
    ctx = ctx.transpose(0, 2, 1, 3).reshape(B, S, d)
    xr = x + (ctx @ p["w_o"] + p["b_o"])
    xf = ln(xr * mask, p["ln_ffn_g"], p["ln_ffn_b"])
    ff = jnp.maximum(xf @ p["w1"] + p["b1"], 0.0) @ p["w2"] + p["b2"]
    return xr + ff


if __name__ == "__main__":
    batch, seq, num_head, d_model, d_ff = 2, 8, 4, 128, 256
    key = jax.random.PRNGKey(0)
    kx, kp = jax.random.split(key)

    x = jax.random.normal(kx, (batch, seq, d_model), jnp.float32)
    lengths = jnp.array([seq, seq - 3])
    mask = (jnp.arange(seq)[None, :] < lengths[:, None]).astype(jnp.float32)[..., None]

    params = init_params(kp, d_model, d_ff)
    prep = prepare_params(params)          # bf16 weight cast done once, outside forward

    out = encoder_layer_forward(x, mask, prep, num_head=num_head)
    out = jax.block_until_ready(out)

    ref = reference_encoder_layer(x, mask, params, num_head=num_head)
    assert out.shape == (batch, seq, d_model)
    err = float(jnp.max(jnp.abs(out - ref)))
    assert err < 1e-1, err  # bf16 matmul / bf16 activation tolerance vs f32 reference

    print("KERNEL_OK")
</pallas_src>

<mosaic_0001>
module attributes {stable_mosaic.version = 11 : i64} {
  func.func @_ln_qkv_kernel(%arg0: i32, %arg1: memref<16x128xf32, #tpu.memory_space<vmem>>, %arg2: memref<16x1xf32, #tpu.memory_space<vmem>>, %arg3: memref<1x128xf32, #tpu.memory_space<vmem>>, %arg4: memref<1x128xf32, #tpu.memory_space<vmem>>, %arg5: memref<128x128xbf16, #tpu.memory_space<vmem>>, %arg6: memref<128x128xbf16, #tpu.memory_space<vmem>>, %arg7: memref<128x128xbf16, #tpu.memory_space<vmem>>, %arg8: memref<1x128xf32, #tpu.memory_space<vmem>>, %arg9: memref<1x128xf32, #tpu.memory_space<vmem>>, %arg10: memref<1x128xf32, #tpu.memory_space<vmem>>, %arg11: memref<16x128xbf16, #tpu.memory_space<vmem>>, %arg12: memref<16x128xbf16, #tpu.memory_space<vmem>>, %arg13: memref<16x128xbf16, #tpu.memory_space<vmem>>) attributes {dimension_semantics = [#tpu.dimension_semantics<parallel>], iteration_bounds = array<i64: 1>, scalar_prefetch = 0 : i64, scratch_operands = 0 : i64, tpu.core_type = #tpu.core_type<tc>, window_params = [{transform_indices = @transform_0, window_bounds = array<i64: 16, 128>}, {transform_indices = @transform_1, window_bounds = array<i64: 16, 1>}, {pipeline_mode = #tpu.pipeline_mode<synchronous>, transform_indices = @transform_2, window_bounds = array<i64: 1, 128>}, {pipeline_mode = #tpu.pipeline_mode<synchronous>, transform_indices = @transform_3, window_bounds = array<i64: 1, 128>}, {pipeline_mode = #tpu.pipeline_mode<synchronous>, transform_indices = @transform_4, window_bounds = array<i64: 128, 128>}, {pipeline_mode = #tpu.pipeline_mode<synchronous>, transform_indices = @transform_5, window_bounds = array<i64: 128, 128>}, {pipeline_mode = #tpu.pipeline_mode<synchronous>, transform_indices = @transform_6, window_bounds = array<i64: 128, 128>}, {pipeline_mode = #tpu.pipeline_mode<synchronous>, transform_indices = @transform_7, window_bounds = array<i64: 1, 128>}, {pipeline_mode = #tpu.pipeline_mode<synchronous>, transform_indices = @transform_8, window_bounds = array<i64: 1, 128>}, {pipeline_mode = #tpu.pipeline_mode<synchronous>, transform_indices = @transform_9, window_bounds = array<i64: 1, 128>}, {transform_indices = @transform_10, window_bounds = array<i64: 16, 128>}, {transform_indices = @transform_11, window_bounds = array<i64: 16, 128>}, {transform_indices = @transform_12, window_bounds = array<i64: 16, 128>}]} {
    %c0 = arith.constant 0 : index
    %c0_0 = arith.constant 0 : index
    %0 = vector.load %arg1[%c0, %c0_0] : memref<16x128xf32, #tpu.memory_space<vmem>>, vector<16x128xf32>
    %c0_1 = arith.constant 0 : index
    %c0_2 = arith.constant 0 : index
    %1 = vector.load %arg2[%c0_1, %c0_2] : memref<16x1xf32, #tpu.memory_space<vmem>>, vector<16x1xf32>
    %c0_3 = arith.constant 0 : index
    %c0_4 = arith.constant 0 : index
    %2 = vector.load %arg3[%c0_3, %c0_4] : memref<1x128xf32, #tpu.memory_space<vmem>>, vector<1x128xf32>
    %c0_5 = arith.constant 0 : index
    %c0_6 = arith.constant 0 : index
    %3 = vector.load %arg4[%c0_5, %c0_6] : memref<1x128xf32, #tpu.memory_space<vmem>>, vector<1x128xf32>
    %4 = vector.broadcast %1 : vector<16x1xf32> to vector<16x128xf32>
    %5 = arith.mulf %0, %4 : vector<16x128xf32>
    %cst = arith.constant dense<0.000000e+00> : vector<16xf32>
    %6 = vector.multi_reduction <add>, %5, %cst [1] : vector<16x128xf32> to vector<16xf32>
    %7 = vector.shape_cast %6 : vector<16xf32> to vector<16x1xf32>
    %cst_7 = arith.constant 1.280000e+02 : f32
    %8 = vector.broadcast %cst_7 : f32 to vector<16x1xf32>
    %9 = arith.divf %7, %8 : vector<16x1xf32>
    %10 = vector.broadcast %9 : vector<16x1xf32> to vector<16x128xf32>
    %11 = arith.subf %5, %10 : vector<16x128xf32>
    %12 = arith.mulf %11, %11 : vector<16x128xf32>
    %cst_8 = arith.constant dense<0.000000e+00> : vector<16xf32>
    %13 = vector.multi_reduction <add>, %12, %cst_8 [1] : vector<16x128xf32> to vector<16xf32>
    %14 = vector.shape_cast %13 : vector<16xf32> to vector<16x1xf32>
    %cst_9 = arith.constant 1.280000e+02 : f32
    %15 = vector.broadcast %cst_9 : f32 to vector<16x1xf32>
    %16 = arith.divf %14, %15 : vector<16x1xf32>
    %cst_10 = arith.constant 9.99999974E-6 : f32
    %17 = vector.broadcast %cst_10 : f32 to vector<16x1xf32>
    %18 = arith.addf %16, %17 : vector<16x1xf32>
    %19 = math.rsqrt %18 : vector<16x1xf32>
    %20 = vector.broadcast %19 : vector<16x1xf32> to vector<16x128xf32>
    %21 = arith.mulf %11, %20 : vector<16x128xf32>
    %22 = vector.broadcast %2 : vector<1x128xf32> to vector<16x128xf32>
    %23 = arith.mulf %21, %22 : vector<16x128xf32>
    %24 = vector.broadcast %3 : vector<1x128xf32> to vector<16x128xf32>
    %25 = arith.addf %23, %24 : vector<16x128xf32>
    %26 = arith.truncf %25 : vector<16x128xf32> to vector<16x128xbf16>
    %c0_11 = arith.constant 0 : index
    %c0_12 = arith.constant 0 : index
    %27 = vector.load %arg5[%c0_11, %c0_12] : memref<128x128xbf16, #tpu.memory_space<vmem>>, vector<128x128xbf16>
    %cst_13 = arith.constant dense<0.000000e+00> : vector<16x128xf32>
    %28 = tpu.matmul %26, %27, %cst_13 {dimension_numbers = #tpu.dot_dimension_numbers<[1], [0], [0], [1], [0, 0, 1, 1], [], []>} : vector<16x128xbf16>, vector<128x128xbf16>, vector<16x128xf32> -> vector<16x128xf32>
    %c0_14 = arith.constant 0 : index
    %c0_15 = arith.constant 0 : index
    %29 = vector.load %arg8[%c0_14, %c0_15] : memref<1x128xf32, #tpu.memory_space<vmem>>, vector<1x128xf32>
    %30 = vector.broadcast %29 : vector<1x128xf32> to vector<16x128xf32>
    %31 = arith.addf %28, %30 : vector<16x128xf32>
    %32 = arith.truncf %31 : vector<16x128xf32> to vector<16x128xbf16>
    %c0_16 = arith.constant 0 : index
    %c0_17 = arith.constant 0 : index
    %33 = vector.load %arg11[%c0_16, %c0_17] : memref<16x128xbf16, #tpu.memory_space<vmem>>, vector<16x128xbf16>
    tpu.vector_store %arg11[%c0_16, %c0_17], %32 {strides = array<i32>} : memref<16x128xbf16, #tpu.memory_space<vmem>>, vector<16x128xbf16>,
    %c0_18 = arith.constant 0 : index
    %c0_19 = arith.constant 0 : index
    %34 = vector.load %arg6[%c0_18, %c0_19] : memref<128x128xbf16, #tpu.memory_space<vmem>>, vector<128x128xbf16>
    %cst_20 = arith.constant dense<0.000000e+00> : vector<16x128xf32>
    %35 = tpu.matmul %26, %34, %cst_20 {dimension_numbers = #tpu.dot_dimension_numbers<[1], [0], [0], [1], [0, 0, 1, 1], [], []>} : vector<16x128xbf16>, vector<128x128xbf16>, vector<16x128xf32> -> vector<16x128xf32>
    %c0_21 = arith.constant 0 : index
    %c0_22 = arith.constant 0 : index
    %36 = vector.load %arg9[%c0_21, %c0_22] : memref<1x128xf32, #tpu.memory_space<vmem>>, vector<1x128xf32>
    %37 = vector.broadcast %36 : vector<1x128xf32> to vector<16x128xf32>
    %38 = arith.addf %35, %37 : vector<16x128xf32>
    %39 = arith.truncf %38 : vector<16x128xf32> to vector<16x128xbf16>
    %c0_23 = arith.constant 0 : index
    %c0_24 = arith.constant 0 : index
    %40 = vector.load %arg12[%c0_23, %c0_24] : memref<16x128xbf16, #tpu.memory_space<vmem>>, vector<16x128xbf16>
    tpu.vector_store %arg12[%c0_23, %c0_24], %39 {strides = array<i32>} : memref<16x128xbf16, #tpu.memory_space<vmem>>, vector<16x128xbf16>,
    %c0_25 = arith.constant 0 : index
    %c0_26 = arith.constant 0 : index
    %41 = vector.load %arg7[%c0_25, %c0_26] : memref<128x128xbf16, #tpu.memory_space<vmem>>, vector<128x128xbf16>
    %cst_27 = arith.constant dense<0.000000e+00> : vector<16x128xf32>
    %42 = tpu.matmul %26, %41, %cst_27 {dimension_numbers = #tpu.dot_dimension_numbers<[1], [0], [0], [1], [0, 0, 1, 1], [], []>} : vector<16x128xbf16>, vector<128x128xbf16>, vector<16x128xf32> -> vector<16x128xf32>
    %c0_28 = arith.constant 0 : index
    %c0_29 = arith.constant 0 : index
    %43 = vector.load %arg10[%c0_28, %c0_29] : memref<1x128xf32, #tpu.memory_space<vmem>>, vector<1x128xf32>
    %44 = vector.broadcast %43 : vector<1x128xf32> to vector<16x128xf32>
    %45 = arith.addf %42, %44 : vector<16x128xf32>
    %46 = arith.truncf %45 : vector<16x128xf32> to vector<16x128xbf16>
    %c0_30 = arith.constant 0 : index
    %c0_31 = arith.constant 0 : index
    %47 = vector.load %arg13[%c0_30, %c0_31] : memref<16x128xbf16, #tpu.memory_space<vmem>>, vector<16x128xbf16>
    tpu.vector_store %arg13[%c0_30, %c0_31], %46 {strides = array<i32>} : memref<16x128xbf16, #tpu.memory_space<vmem>>, vector<16x128xbf16>,
    return
  }
  func.func @transform_0(%arg0: i32) -> (i32, i32) {
    %c0_i32 = arith.constant 0 : i32
    %c0_i32_0 = arith.constant 0 : i32
    return %arg0, %c0_i32 : i32, i32
  }
  func.func @transform_1(%arg0: i32) -> (i32, i32) {
    %c0_i32 = arith.constant 0 : i32
    %c0_i32_0 = arith.constant 0 : i32
    return %arg0, %c0_i32 : i32, i32
  }
  func.func @transform_2(%arg0: i32) -> (i32, i32) {
    %c0_i32 = arith.constant 0 : i32
    %c0_i32_0 = arith.constant 0 : i32
    %c0_i32_1 = arith.constant 0 : i32
    return %c0_i32, %c0_i32_0 : i32, i32
  }
  func.func @transform_3(%arg0: i32) -> (i32, i32) {
    %c0_i32 = arith.constant 0 : i32
    %c0_i32_0 = arith.constant 0 : i32
    %c0_i32_1 = arith.constant 0 : i32
    return %c0_i32, %c0_i32_0 : i32, i32
  }
  func.func @transform_4(%arg0: i32) -> (i32, i32) {
    %c0_i32 = arith.constant 0 : i32
    %c0_i32_0 = arith.constant 0 : i32
    %c0_i32_1 = arith.constant 0 : i32
    return %c0_i32, %c0_i32_0 : i32, i32
  }
  func.func @transform_5(%arg0: i32) -> (i32, i32) {
    %c0_i32 = arith.constant 0 : i32
    %c0_i32_0 = arith.constant 0 : i32
    %c0_i32_1 = arith.constant 0 : i32
    return %c0_i32, %c0_i32_0 : i32, i32
  }
  func.func @transform_6(%arg0: i32) -> (i32, i32) {
    %c0_i32 = arith.constant 0 : i32
    %c0_i32_0 = arith.constant 0 : i32
    %c0_i32_1 = arith.constant 0 : i32
    return %c0_i32, %c0_i32_0 : i32, i32
  }
  func.func @transform_7(%arg0: i32) -> (i32, i32) {
    %c0_i32 = arith.constant 0 : i32
    %c0_i32_0 = arith.constant 0 : i32
    %c0_i32_1 = arith.constant 0 : i32
    return %c0_i32, %c0_i32_0 : i32, i32
  }
  func.func @transform_8(%arg0: i32) -> (i32, i32) {
    %c0_i32 = arith.constant 0 : i32
    %c0_i32_0 = arith.constant 0 : i32
    %c0_i32_1 = arith.constant 0 : i32
    return %c0_i32, %c0_i32_0 : i32, i32
  }
  func.func @transform_9(%arg0: i32) -> (i32, i32) {
    %c0_i32 = arith.constant 0 : i32
    %c0_i32_0 = arith.constant 0 : i32
    %c0_i32_1 = arith.constant 0 : i32
    return %c0_i32, %c0_i32_0 : i32, i32
  }
  func.func @transform_10(%arg0: i32) -> (i32, i32) {
    %c0_i32 = arith.constant 0 : i32
    %c0_i32_0 = arith.constant 0 : i32
    return %arg0, %c0_i32 : i32, i32
  }
  func.func @transform_11(%arg0: i32) -> (i32, i32) {
    %c0_i32 = arith.constant 0 : i32
    %c0_i32_0 = arith.constant 0 : i32
    return %arg0, %c0_i32 : i32, i32
  }
  func.func @transform_12(%arg0: i32) -> (i32, i32) {
    %c0_i32 = arith.constant 0 : i32
    %c0_i32_0 = arith.constant 0 : i32
    return %arg0, %c0_i32 : i32, i32
  }
}

</mosaic_0001>

<bundles_post_ra>
// kernel: tpu_custom_call.1
= control target key start
LH: loop header
LB: loop body
LE: loop exit
PB: predicated region body
PF: predicated region fallthrough
CT: control target
= control target key end

     0   :  { %18 = vsyncpa [#allocation3], 0  ;;  %s1115_s0 = inlined_call_operand.vmem [shape: f32[16,128], index: 0, kind: input, shape index: {}]   ;;  %s1116_s1 = inlined_call_operand.vmem [shape: f32[16,1], index: 1, kind: input, shape index: {}]   ;;  %s1117_s2 = inlined_call_operand.vmem [shape: f32[1,128], index: 2, kind: input, shape index: {}]   ;;  %s1118_s3 = inlined_call_operand.vmem [shape: f32[1,128], index: 3, kind: input, shape index: {}]   ;;  %s1119_s4 = inlined_call_operand.hbm [shape: bf16[128,128], index: 4, kind: input, shape index: {}]   ;;  %s1120_s5 = inlined_call_operand.hbm [shape: bf16[128,128], index: 5, kind: input, shape index: {}]   ;;  %s1121_s6 = inlined_call_operand.hbm [shape: bf16[128,128], index: 6, kind: input, shape index: {}]   ;;  %s1122_s7 = inlined_call_operand.vmem [shape: f32[1,128], index: 7, kind: input, shape index: {}]   ;;  %s1123_s8 = inlined_call_operand.vmem [shape: f32[1,128], index: 8, kind: input, shape index: {}]   ;;  %s1124_s9 = inlined_call_operand.vmem [shape: f32[1,128], index: 9, kind: input, shape index: {}]   ;;  %s1125_s10 = inlined_call_operand.hbm [shape: bf16[16,128], index: 10, kind: output, shape index: {0}]   ;;  %s1126_s11 = inlined_call_operand.hbm [shape: bf16[16,128], index: 11, kind: output, shape index: {1}]   ;;  %s1127_s12 = inlined_call_operand.hbm [shape: bf16[16,128], index: 12, kind: output, shape index: {2}]  }
   0x1   :  { %19 = vsyncpa [#allocation6], 0 }
   0x2   :  { %20 = vsyncpa [#allocation4], 0 }
   0x3   :  { %21 = vsyncpa [#allocation10], 0  ;;  %s878_s21 = smov [#allocation5]   ;;  %s879_s23 = smov [#allocation2]  }
   0x4   :  { %s47_s22 = sshll.u32 %s878_s21, 4  ;;  %s35_s24 = sshll.u32 %s879_s23, 4  ;;  %s48_s22 = int_to_ptr.vmem [resolvable:$true] %s47_s22  ;;  %s954_s24 = int_to_ptr.vmem [resolvable:$true] %s35_s24 }
   0x5   :  { %s738_s27 = scalar_lea.hbm %s1120_s5, 1024 }
   0x6   :  { %p739_p0 = scmp.ne.s32.totalorder %s1120_s5, %s738_s27  ;;  %p742_p1 = scmp.lt.u32.totalorder %s738_s27, %s1120_s5 }
   0x8   :  { %p744_p2 = pnand %p742_p1, %p739_p0 }
   0xa   :  { %747 = shalt.err (!%p744_p2)
}
   0xb   :  { %s748_s14 = scalar_lea.vmem %s48_s22, 1024  ;;  %p753_p4 = scmp.lt.s32.totalorder %s48_s22, %s48_s22 }
   0xc   :  { %p749_p3 = scmp.ne.s32.totalorder %s48_s22, %s748_s14  ;;  %p754_p5 = scmp.lt.s32.totalorder %s748_s14, %s748_s14 }
   0xe   :  { %p755_p6 = por %p754_p5, %p753_p4 }
  0x10   :  { %p756_p7 = pnand %p755_p6, %p749_p3 }
  0x12   :  { %759 = shalt.err (!%p756_p7)
}
  0x13   :  { %s880_s15 = smov 64   ;;  %s881_s16 = smov 4  }
  0x14   :  { %53 = dma.hbm_to_vmem [thread:$0]  %s1120_s5, 1024, %s48_s22, [#allocation6], %s880_s15, %s880_s15, %s881_s16  }
  0x15   :  { %s760_s21 = scalar_lea.hbm %s1119_s4, 1024 }
  0x16   :  { %p761_p8 = scmp.ne.s32.totalorder %s1119_s4, %s760_s21  ;;  %p764_p9 = scmp.lt.u32.totalorder %s760_s21, %s1119_s4 }
  0x18   :  { %p766_p10 = pnand %p764_p9, %p761_p8 }
  0x1a   :  { %769 = shalt.err (!%p766_p10)
}
  0x1b   :  { %s770_s28 = scalar_lea.vmem %s954_s24, 1024  ;;  %p775_p12 = scmp.lt.s32.totalorder %s954_s24, %s954_s24 }
  0x1c   :  { %p771_p11 = scmp.ne.s32.totalorder %s954_s24, %s770_s28  ;;  %p776_p13 = scmp.lt.s32.totalorder %s770_s28, %s770_s28 }
  0x1e   :  { %p777_p0 = por %p776_p13, %p775_p12 }
  0x20   :  { %p778_p1 = pnand %p777_p0, %p771_p11 }
  0x22   :  { %781 = shalt.err (!%p778_p1)
}
  0x23   :  { %41 = dma.hbm_to_vmem [thread:$0]  %s1119_s4, 1024, %s954_s24, [#allocation3], %s880_s15, %s880_s15, %s881_s16  }
  0x24   :  { %s882_s29 = smov [#allocation7]   ;;  %s782_s17 = scalar_lea.hbm %s1121_s6, 1024 }
  0x25   :  { %s59_s30 = sshll.u32 %s882_s29, 4  ;;  %p783_p2 = scmp.ne.s32.totalorder %s1121_s6, %s782_s17  ;;  %s60_s30 = int_to_ptr.vmem [resolvable:$true] %s59_s30 }
  0x26   :  { %p786_p3 = scmp.lt.u32.totalorder %s782_s17, %s1121_s6 }
  0x28   :  { %p788_p4 = pnand %p786_p3, %p783_p2 }
  0x2a   :  { %791 = shalt.err (!%p788_p4)
}
  0x2b   :  { %s792_s23 = scalar_lea.vmem %s60_s30, 1024  ;;  %p797_p6 = scmp.lt.s32.totalorder %s60_s30, %s60_s30 }
  0x2c   :  { %p793_p5 = scmp.ne.s32.totalorder %s60_s30, %s792_s23  ;;  %p798_p7 = scmp.lt.s32.totalorder %s792_s23, %s792_s23 }
  0x2e   :  { %p799_p8 = por %p798_p7, %p797_p6 }
  0x30   :  { %p800_p9 = pnand %p799_p8, %p793_p5 }
  0x32   :  { %803 = shalt.err (!%p800_p9)
}
  0x33   :  { %65 = dma.hbm_to_vmem [thread:$0]  %s1121_s6, 1024, %s60_s30, [#allocation6], %s880_s15, %s880_s15, %s881_s16  }
  0x34   :  { %870 = dma.done.wait [#allocation3], 1024  }
  0x35   :  { %871 = vsyncadd [#allocation3], 4294966272 }
  0x36   :  { %872 = dma.done.wait [#allocation6], 2048  }
  0x37   :  { %873 = vsyncadd [#allocation6], 4294965248  ;;  %v883_v0 = vmov 0   ;;  %v84_v1 = vld [vmem:[%s1116_s1] sm:$0xff]  ;;  %v85_v2 = vld [vmem:[%s1116_s1 + $0x8] sm:$0xff]  ;;  %v884_v11 = vmov 0.0  }
  0x38   :  { %709 = vset.pattern.permute.xlu0 %v883_v0  ;;  %v82_v3 = vld [vmem:[%s1115_s0] sm:$0xff]  ;;  %v83_v6 = vld [vmem:[%s1115_s0 + $0x8] sm:$0xff]  ;;  %638 = vmatprep.subr.bf16.mxu0 %v884_v11  ;;  %v714_v22 = vld [vmem:[#allocation2 + $0x10] sm:$0xff]   ;;  %vm885_vm0 = vmmov 0   ;;  %s886_s18 = smov [#allocation9]   ;;  %s887_s20 = smov [#allocation8]  }
  0x39   :  { %90 = vperm.xlu0 %709, %v84_v1   ;;  %v710_v9 = vld [vmem:[#allocation2] sm:$0xff]   ;;  %658 = vmatprep.subr.bf16.mxu1 %v884_v11  ;;  %v712_v12 = vld [vmem:[#allocation2 + $0x8] sm:$0xff]   ;;  %v715_v23 = vld [vmem:[#allocation5 + $0x10] sm:$0xff]   ;;  %s523_s19 = sshll.u32 %s886_s18, 4  ;;  %s524_s19 = int_to_ptr.vmem [resolvable:$true] %s523_s19 }
  0x3a   :  { %v711_v10 = vld [vmem:[#allocation5] sm:$0xff]   ;;  %639 = vmatpush3.bf16.msra.mxu0 %v710_v9  ;;  %v713_v21 = vld [vmem:[#allocation5 + $0x8] sm:$0xff]   ;;  %v716_v24 = vld [vmem:[#allocation2 + $0x18] sm:$0xff]   ;;  %654 = vmatprep.mubr.msk.bf16.mxu0 %vm885_vm0, %v884_v11  ;;  %p809_p11 = scmp.lt.s32.totalorder %s524_s19, %s524_s19 }
  0x3b   :  { %659 = vmatpush3.bf16.msra.mxu1 %v711_v10  ;;  %640 = vmatprep.subr.bf16.mxu0 %v884_v11  ;;  %v717_v25 = vld [vmem:[#allocation5 + $0x18] sm:$0xff]   ;;  %v718_v26 = vld [vmem:[#allocation2 + $0x20] sm:$0xff]   ;;  %v720_v28 = vld [vmem:[#allocation2 + $0x28] sm:$0xff]  }
  0x3c   :  { %660 = vmatprep.subr.bf16.mxu1 %v884_v11  ;;  %v719_v27 = vld [vmem:[#allocation5 + $0x20] sm:$0xff]   ;;  %674 = vmatprep.mubr.msk.bf16.mxu1 %vm885_vm0, %v884_v11  ;;  %v721_v29 = vld [vmem:[#allocation5 + $0x28] sm:$0xff]   ;;  %v722_v30 = vld [vmem:[#allocation2 + $0x30] sm:$0xff]  }
  0x3d   :  { %95 = vperm.xlu0 %709, %v85_v2   ;;  %v723_v31 = vld [vmem:[#allocation5 + $0x30] sm:$0xff]   ;;  %v724_v32 = vld [vmem:[#allocation2 + $0x38] sm:$0xff]   ;;  %v555_v42 = vld [vmem:[%s1117_s2] ss:$0 sm:$0xff] }
  0x3e   :  { %641 = vmatpush3.bf16.msra.mxu0 %v712_v12  ;;  %v725_v33 = vld [vmem:[#allocation5 + $0x38] sm:$0xff]   ;;  %v556_v46 = vld [vmem:[%s1118_s3] ss:$0 sm:$0xff]  ;;  %v727_v52 = vld [vmem:[#allocation7 + $0x8] sm:$0xff]  }
  0x3f   :  { %642 = vmatprep.subr.bf16.mxu0 %v884_v11  ;;  %661 = vmatpush3.bf16.msra.mxu1 %v713_v21  ;;  %v726_v50 = vld [vmem:[#allocation7] sm:$0xff]   ;;  %v728_v53 = vld [vmem:[#allocation7 + $0x10] sm:$0xff]   ;;  %v729_v54 = vld [vmem:[#allocation7 + $0x18] sm:$0xff]  }
  0x40   :  { %662 = vmatprep.subr.bf16.mxu1 %v884_v11  ;;  %v730_v55 = vld [vmem:[#allocation7 + $0x20] sm:$0xff]   ;;  %v731_v56 = vld [vmem:[#allocation7 + $0x28] sm:$0xff]   ;;  %v732_v57 = vld [vmem:[#allocation7 + $0x30] sm:$0xff]  }
  0x41   :  { %v733_v58 = vld [vmem:[#allocation7 + $0x38] sm:$0xff]   ;;  %v557_v59 = vld [vmem:[%s1122_s7] ss:$0 sm:$0xff]  ;;  %s511_s7 = sshll.u32 %s887_s20, 4  ;;  %s1060_s7 = int_to_ptr.vmem [resolvable:$true] %s511_s7 }
  0x42   :  { %643 = vmatpush3.bf16.msra.mxu0 %v714_v22  ;;  %v568_v61 = vld [vmem:[%s1123_s8] ss:$0 sm:$0xff]  ;;  %s804_s8 = scalar_lea.vmem %s524_s19, 128 }
  0x43   :  { %663 = vmatpush3.bf16.msra.mxu1 %v715_v23  ;;  %644 = vmatprep.subr.bf16.mxu0 %v884_v11  ;;  %p805_p10 = scmp.ne.s32.totalorder %s524_s19, %s804_s8  ;;  %p810_p12 = scmp.lt.s32.totalorder %s804_s8, %s804_s8 }
  0x44   :  { %664 = vmatprep.subr.bf16.mxu1 %v884_v11 }
  0x45   :  { %p811_p13 = por %p810_p12, %p809_p11 }
  0x46   :  { %645 = vmatpush3.bf16.msra.mxu0 %v716_v24 }
  0x47   :  { %665 = vmatpush3.bf16.msra.mxu1 %v717_v25  ;;  %646 = vmatprep.subr.bf16.mxu0 %v884_v11  ;;  %p812_p0 = pnand %p811_p13, %p805_p10 }
  0x48   :  { %666 = vmatprep.subr.bf16.mxu1 %v884_v11 }
  0x4a   :  { %647 = vmatpush3.bf16.msra.mxu0 %v718_v26 }
  0x4b   :  { %667 = vmatpush3.bf16.msra.mxu1 %v719_v27  ;;  %648 = vmatprep.subr.bf16.mxu0 %v884_v11 }
  0x4c   :  { %668 = vmatprep.subr.bf16.mxu1 %v884_v11 }
  0x4e   :  { %649 = vmatpush3.bf16.msra.mxu0 %v720_v28 }
  0x4f   :  { %669 = vmatpush3.bf16.msra.mxu1 %v721_v29  ;;  %650 = vmatprep.subr.bf16.mxu0 %v884_v11 }
  0x50   :  { %670 = vmatprep.subr.bf16.mxu1 %v884_v11 }
  0x52   :  { %651 = vmatpush3.bf16.msra.mxu0 %v722_v30 }
  0x53   :  { %671 = vmatpush3.bf16.msra.mxu1 %v723_v31  ;;  %652 = vmatprep.subr.bf16.mxu0 %v884_v11 }
  0x54   :  { %672 = vmatprep.subr.bf16.mxu1 %v884_v11 }
  0x56   :  { %653 = vmatpush3.bf16.msra.mxu0 %v724_v32 }
  0x57   :  { %673 = vmatpush3.bf16.msra.mxu1 %v725_v33  ;;  %678 = vmatprep.subr.bf16.mxu0 %v884_v11 }
  0xb8   :  { %v91_v4 = vpop.permute.xlu0 %90 }
  0xb9   :  { %v98_v5 = vmul.f32 %v91_v4, %v82_v3 }
  0xbb   :  { %100 = vadd.xlane.f32.xlu1 %v98_v5 }
  0xbc   :  { %v96_v7 = vpop.permute.xlu0 %95 }
  0xbd   :  { %v99_v8 = vmul.f32 %v96_v7, %v83_v6 }
  0xbf   :  { %102 = vadd.xlane.f32.xlu1 %v99_v8 }
 0x148   :  { %v101_v13 = vpop.xlane.xlu1 %100 }
 0x149   :  { %v105_v14 = vmul.f32 0.0078125, %v101_v13 }
 0x14b   :  { %v107_v15 = vsub.f32 %v98_v5, %v105_v14 }
 0x14c   :  { %v103_v16 = vpop.xlane.xlu1 %102 }
 0x14d   :  { %v106_v17 = vmul.f32 0.0078125, %v103_v16  ;;  %v109_v18 = vmul.f32 %v107_v15, %v107_v15 }
 0x14f   :  { %v108_v19 = vsub.f32 %v99_v8, %v106_v17  ;;  %111 = vadd.xlane.f32.xlu0 %v109_v18 }
 0x151   :  { %v110_v20 = vmul.f32 %v108_v19, %v108_v19 }
 0x153   :  { %113 = vadd.xlane.f32.xlu1 %v110_v20 }
 0x1dc   :  { %v112_v34 = vpop.xlane.xlu0 %111 }
 0x1dd   :  { %v115_v35 = vmul.f32 0.0078125, %v112_v34 }
 0x1df   :  { %v117_v36 = vadd.f32 1e-05, %v115_v35 }
 0x1e0   :  { %v114_v37 = vpop.xlane.xlu1 %113 }
 0x1e1   :  { %734 = vrsqrt.f32 %v117_v36  ;;  %v116_v38 = vmul.f32 0.0078125, %v114_v37 }
 0x1e3   :  { %v118_v39 = vadd.f32 1e-05, %v116_v38 }
 0x1e5   :  { %736 = vrsqrt.f32 %v118_v39 }
 0x1eb   :  { %v735_v40 = vpop.eup %734 }
 0x1ec   :  { %v121_v41 = vmul.f32 %v735_v40, %v107_v15 }
 0x1ee   :  { %v129_v45 = vmul.f32 %v555_v42, %v121_v41 }
 0x1ef   :  { %v737_v43 = vpop.eup %736 }
 0x1f0   :  { %v122_v44 = vmul.f32 %v737_v43, %v108_v19  ;;  %v137_v48 = vadd.f32 %v556_v46, %v129_v45 }
 0x1f2   :  { %v130_v47 = vmul.f32 %v555_v42, %v122_v44 }
 0x1f4   :  { %v138_v49 = vadd.f32 %v556_v46, %v130_v47 }
 0x1f6   :  { %v139_v51 = vpack.c.bf16 %v138_v49, %v137_v48 }
 0x1f8   :  { %655 = vmatmul.mubr.bf16.vlgmr.msra.gmra.mrb[0].mxu0 %v139_v51  ;;  %675 = vmatmul.mubr.bf16.vlgmr.msra.gmra.mrb[0].mxu1 %v139_v51 }
 0x1f9   :  { %679 = vmatpush3.bf16.msra.mxu0 %v726_v50  ;;  %694 = vmatprep.mubr.msk.bf16.mxu0 %vm885_vm0, %v884_v11 }
 0x1fa   :  { %680 = vmatprep.subr.bf16.mxu0 %v884_v11 }
 0x1fd   :  { %681 = vmatpush3.bf16.msra.mxu0 %v727_v52 }
 0x1fe   :  { %682 = vmatprep.subr.bf16.mxu0 %v884_v11 }
 0x201   :  { %683 = vmatpush3.bf16.msra.mxu0 %v728_v53 }
 0x202   :  { %684 = vmatprep.subr.bf16.mxu0 %v884_v11 }
 0x205   :  { %685 = vmatpush3.bf16.msra.mxu0 %v729_v54 }
 0x206   :  { %686 = vmatprep.subr.bf16.mxu0 %v884_v11 }
 0x209   :  { %687 = vmatpush3.bf16.msra.mxu0 %v730_v55 }
 0x20a   :  { %688 = vmatprep.subr.bf16.mxu0 %v884_v11 }
 0x20d   :  { %689 = vmatpush3.bf16.msra.mxu0 %v731_v56 }
 0x20e   :  { %690 = vmatprep.subr.bf16.mxu0 %v884_v11 }
 0x211   :  { %691 = vmatpush3.bf16.msra.mxu0 %v732_v57 }
 0x212   :  { %692 = vmatprep.subr.bf16.mxu0 %v884_v11 }
 0x215   :  { %693 = vmatpush3.bf16.msra.mxu0 %v733_v58 }
 0x218   :  { %695 = vmatmul.mubr.bf16.vlgmr.msra.gmra.mrb[4].mxu0 %v139_v51 }
 0x2cb   :  { %v245_v60 = vpop.f32.mrb[0].mxu0  ;;  %v367_v62 = vpop.f32.mrb[0].mxu1 }
 0x2cc   :  { %v656_v63 = vpop.f32.mrb[1].mxu0  ;;  %v676_v0 = vpop.f32.mrb[1].mxu1  ;;  %v246_v3 = vadd.f32 %v557_v59, %v245_v60  ;;  %v368_v4 = vadd.f32 %v568_v61, %v367_v62 }
 0x2cd   :  { %v248_v1 = vpop.f32.mrb[2].mxu0  ;;  %v370_v2 = vpop.f32.mrb[2].mxu1 }
 0x2ce   :  { %v249_v5 = vadd.f32 %v557_v59, %v248_v1  ;;  %v371_v6 = vadd.f32 %v568_v61, %v370_v2  ;;  %v657_v7 = vpop.f32.mrb[3].mxu0  ;;  %v677_v8 = vpop.f32.mrb[3].mxu1 }
 0x2d0   :  { %v599_v9 = vpack.c.bf16 %v249_v5, %v246_v3  ;;  %v604_v10 = vpack.c.bf16 %v371_v6, %v368_v4 }
 0x2d2   :  { %600 = vst [vmem:[#allocation8] sm:$0xff] %v599_v9   ;;  %605 = vst [vmem:[#allocation9] sm:$0xff] %v604_v10  }
 0x2d3   :  { %815 = shalt.err (!%p812_p0)
}
 0x2d4   :  { %s816_s4 = scalar_lea.hbm %s1126_s11, 128 }
 0x2d5   :  { %p817_p1 = scmp.ne.s32.totalorder %s1126_s11, %s816_s4  ;;  %p820_p2 = scmp.lt.u32.totalorder %s816_s4, %s1126_s11 }
 0x2d7   :  { %p822_p3 = pnand %p820_p2, %p817_p1 }
 0x2d9   :  { %825 = shalt.err (!%p822_p3)
}
 0x2da   :  { %529 = dma.vmem_to_hbm [thread:$0]  %s524_s19, 128, %s1126_s11, [#allocation10], %s880_s15, %s880_s15, %s881_s16  }
 0x2db   :  { %s826_s22 = scalar_lea.vmem %s1060_s7, 128  ;;  %p831_p5 = scmp.lt.s32.totalorder %s1060_s7, %s1060_s7 }
 0x2dc   :  { %p827_p4 = scmp.ne.s32.totalorder %s1060_s7, %s826_s22  ;;  %p832_p6 = scmp.lt.s32.totalorder %s826_s22, %s826_s22 }
 0x2de   :  { %p833_p7 = por %p832_p6, %p831_p5 }
 0x2e0   :  { %p834_p8 = pnand %p833_p7, %p827_p4 }
 0x2e2   :  { %837 = shalt.err (!%p834_p8)
}
 0x2e3   :  { %s838_s0 = scalar_lea.hbm %s1125_s10, 128 }
 0x2e4   :  { %p839_p9 = scmp.ne.s32.totalorder %s1125_s10, %s838_s0  ;;  %p842_p10 = scmp.lt.u32.totalorder %s838_s0, %s1125_s10 }
 0x2e6   :  { %p844_p11 = pnand %p842_p10, %p839_p9 }
 0x2e8   :  { %847 = shalt.err (!%p844_p11)
}
 0x2e9   :  { %517 = dma.vmem_to_hbm [thread:$0]  %s1060_s7, 128, %s1125_s10, [#allocation4], %s880_s15, %s880_s15, %s881_s16  }
 0x2ea   :  { %v579_v11 = vld [vmem:[%s1124_s9] ss:$0 sm:$0xff]  ;;  %s888_s18 = smov [#allocation11]  }
 0x2eb   :  { %v489_v12 = vpop.f32.mrb[4].mxu0  ;;  %s535_s19 = sshll.u32 %s888_s18, 4  ;;  %s536_s19 = int_to_ptr.vmem [resolvable:$true] %s535_s19 }
 0x2ec   :  { %v696_v13 = vpop.f32.mrb[5].mxu0  ;;  %v490_v15 = vadd.f32 %v579_v11, %v489_v12  ;;  %s848_s20 = scalar_lea.vmem %s536_s19, 128  ;;  %p853_p13 = scmp.lt.s32.totalorder %s536_s19, %s536_s19 }
 0x2ed   :  { %v492_v14 = vpop.f32.mrb[6].mxu0  ;;  %p849_p12 = scmp.ne.s32.totalorder %s536_s19, %s848_s20  ;;  %p854_p0 = scmp.lt.s32.totalorder %s848_s20, %s848_s20 }
 0x2ee   :  { %v493_v16 = vadd.f32 %v579_v11, %v492_v14  ;;  %v697_v17 = vpop.f32.mrb[7].mxu0 }
 0x2ef   :  { %p855_p1 = por %p854_p0, %p853_p13 }
 0x2f0   :  { %v609_v18 = vpack.c.bf16 %v493_v16, %v490_v15 }
 0x2f1   :  { %p856_p2 = pnand %p855_p1, %p849_p12 }
 0x2f2   :  { %610 = vst [vmem:[#allocation11] sm:$0xff] %v609_v18  }
 0x2f3   :  { %859 = shalt.err (!%p856_p2)
}
 0x2f4   :  { %s860_s7 = scalar_lea.hbm %s1127_s12, 128 }
 0x2f5   :  { %p861_p3 = scmp.ne.s32.totalorder %s1127_s12, %s860_s7  ;;  %p864_p4 = scmp.lt.u32.totalorder %s860_s7, %s1127_s12 }
 0x2f7   :  { %p866_p5 = pnand %p864_p4, %p861_p3 }
 0x2f9   :  { %869 = shalt.err (!%p866_p5)
}
 0x2fa   :  { %541 = dma.vmem_to_hbm [thread:$0]  %s536_s19, 128, %s1127_s12, [#allocation10], %s880_s15, %s880_s15, %s881_s16  }
 0x2fb   :  { %874 = dma.done.wait [#allocation4], 128  }
 0x2fc   :  { %875 = vsyncadd [#allocation4], 4294967168 }
 0x2fd   :  { %876 = dma.done.wait [#allocation10], 256  }
 0x2fe   :  { %877 = vsyncadd [#allocation10], 4294967040 }
 0x2ff   :  { %551 = vsyncpa [#allocation3], 1 }
 0x300   :  { %552 = vsyncpa [#allocation6], 1 }
 0x301   :  { %553 = vsyncpa [#allocation4], 1 }
 0x302   :  { %554 = vsyncpa [#allocation10], 1 }

</bundles_post_ra>
